<compile_context>
chip_gen: v7x
topology: tpu7x:2x2x1
jax: 0.10.0
libtpu: 0.0.40
codegen_flags: <defaults>
</compile_context>

<pallas_src>
import numpy as np

import jax
import jax.numpy as jnp
from jax.experimental import pallas as pl
from jax.experimental.pallas import tpu as pltpu


# ----------------------------------------------------------------------------
# Kernel: the packing is entirely a data/param-layout transform, so the kernel
# body is just matmul+bias+ReLU x2, matmul+bias.
# ----------------------------------------------------------------------------
def weighted_dnn_kernel(x_ref, w1_ref, b1_ref, w2_ref, b2_ref,
                        w3_ref, b3_ref, o_ref):
    cdt = w1_ref.dtype                       # matmul-input dtype (bf16 default)
    x = x_ref[...].astype(cdt)               # [TB, P*in]
    # fc1 (feature_weights folded into w1) + ReLU
    h = jnp.dot(x, w1_ref[...], preferred_element_type=jnp.float32) + b1_ref[...]
    h = jnp.maximum(h, 0.0)
    # fc2 + ReLU
    h = jnp.dot(h.astype(cdt), w2_ref[...],
                preferred_element_type=jnp.float32) + b2_ref[...]
    h = jnp.maximum(h, 0.0)
    # fc3  (output tile is [TB, P*out] = [TB, 128] -> lane-dense, unmasked vst)
    out = jnp.dot(h.astype(cdt), w3_ref[...],
                  preferred_element_type=jnp.float32) + b3_ref[...]
    o_ref[...] = out.astype(o_ref.dtype)


# ----------------------------------------------------------------------------
# One-time parameter preparation.
# ----------------------------------------------------------------------------
def prepare_params(feature_weights, w1, b1, w2, b2, w3, b3, *,
                   pack=16, matmul_dtype=jnp.bfloat16):
    """Fold feature weights into fc1, build block-diagonal packed weights
    (kron(I_pack, W)) and tiled biases, cast matmul inputs (default bf16 --
    the MXU is bf16-native on v5e/v6e/v7x; accumulation stays f32 in-kernel).

    Weights are expected as [in, out] (already transposed from nn.Linear)."""
    fw = feature_weights.astype(jnp.float32)
    w1_eff = fw[:, None] * w1.astype(jnp.float32)          # fold x*fw into W1

    def bd(w):                                              # block-diagonal
        return jnp.kron(jnp.eye(pack, dtype=jnp.float32),
                        w.astype(jnp.float32)).astype(matmul_dtype)

    def tb_(b):                                             # tiled bias [1, P*out]
        return jnp.tile(b.astype(jnp.float32), pack).reshape(1, -1)

    return (bd(w1_eff), tb_(b1), bd(w2), tb_(b2), bd(w3), tb_(b3)), pack


# ----------------------------------------------------------------------------
# Wrapper
# ----------------------------------------------------------------------------
def _round_up(n, m):
    return ((n + m - 1) // m) * m


def _cdiv(a, b):
    return -(-a // b)


def _n_steps_target():
    # v7x shards "parallel" grid axes across its 2 TensorCores -> prefer an
    # even, balanced grid there.  v5e/v6e have a single TC.
    try:
        kind = jax.devices()[0].device_kind.lower()
        return 2 if "v7" in kind else 1
    except Exception:
        return 1


def _choose_tb(rows, tb_max, n_steps_target):
    """Packed-row tile: large batches get tb_max (amortize the ~0.35us/step
    overhead); small batches get minimally-padded, balanced tiles."""
    tb_max = max(8, (tb_max // 8) * 8)
    if rows >= n_steps_target * tb_max:
        return tb_max
    return min(tb_max, max(8, _round_up(_cdiv(rows, n_steps_target), 8)))


def weighted_dnn_forward(x, packed_params, pack, *, tb_max=512):
    """x: [B, input_size] f32; (packed_params, pack) from prepare_params().

    tb_max is in PACKED rows (pack actual rows each); tb_max=512 with pack=16
    is 8192 actual rows per step, ~3-4 MiB of per-step VMEM -> fits every
    generation's default scoped VMEM (v5e 16 MiB, v6e/v7x 32 MiB)."""
    w1, b1, w2, b2, w3, b3 = packed_params
    B, in_dim = x.shape
    pin, phid = w1.shape                     # pack*in, pack*hidden
    pout = w3.shape[1]                       # pack*out
    assert pin == pack * in_dim, "params/pack inconsistent with x"
    out_dim = pout // pack

    # Pack `pack` batch rows into the lane dimension.  Padded rows produce
    # nonzero garbage (bias->ReLU chain) but are sliced off before return.
    b_pack = _round_up(B, pack)
    if b_pack != B:
        x = jnp.pad(x, ((0, b_pack - B), (0, 0)))
    rows = b_pack // pack
    xp = x.reshape(rows, pin)

    tb = _choose_tb(rows, tb_max, _n_steps_target())
    rows_pad = _round_up(rows, tb)
    if rows_pad != rows:
        xp = jnp.pad(xp, ((0, rows_pad - rows), (0, 0)))
    grid = (rows_pad // tb,)

    weight_bytes = sum(int(p.size) * int(p.dtype.itemsize) for p in packed_params)
    cost = pl.CostEstimate(
        flops=2 * rows_pad * (pin * phid + phid * phid + phid * pout),
        transcendentals=0,
        bytes_accessed=int(rows_pad * pin) * int(xp.dtype.itemsize)
                       + weight_bytes
                       + int(rows_pad * pout) * 4,
    )

    resident = lambda a: pl.BlockSpec(a.shape, lambda i, _a=a: (0,) * _a.ndim)

    out = pl.pallas_call(
        weighted_dnn_kernel,
        out_shape=jax.ShapeDtypeStruct((rows_pad, pout), jnp.float32),
        grid=grid,
        in_specs=[
            pl.BlockSpec((tb, pin), lambda i: (i, 0)),   # x streams over batch
            resident(w1), resident(b1),                  # weights/biases stay
            resident(w2), resident(b2),                  # VMEM-resident
            resident(w3), resident(b3),
        ],
        out_specs=pl.BlockSpec((tb, pout), lambda i: (i, 0)),  # lane-dense (128)
        compiler_params=pltpu.CompilerParams(
            dimension_semantics=("parallel",)),          # megacore-friendly
        cost_estimate=cost,
    )(xp, w1, b1, w2, b2, w3, b3)

    return out.reshape(rows_pad * pack, out_dim)[:B]


# ----------------------------------------------------------------------------
# Init + reference
# ----------------------------------------------------------------------------
def init_linear(key, in_features, out_features):
    """Deterministic init mimicking nn.Linear's uniform(-1/sqrt(in), 1/sqrt(in)).
    Returns weight as [in, out] (already transposed for x @ W)."""
    kw, kb = jax.random.split(key)
    bound = 1.0 / jnp.sqrt(float(in_features))
    w = jax.random.uniform(kw, (in_features, out_features), jnp.float32,
                           minval=-bound, maxval=bound)
    b = jax.random.uniform(kb, (out_features,), jnp.float32,
                           minval=-bound, maxval=bound)
    return w, b


def reference_forward_np(x, feature_weights, raw_params):
    """Host-side float32 numpy reference with the ORIGINAL module semantics."""
    x = np.asarray(x, np.float32)
    fw = np.asarray(feature_weights, np.float32)
    w1, b1, w2, b2, w3, b3 = [np.asarray(p, np.float32) for p in raw_params]
    h = x * fw
    h = np.maximum(h @ w1 + b1, 0.0)
    h = np.maximum(h @ w2 + b2, 0.0)
    return h @ w3 + b3


if __name__ == "__main__":
    input_size, hidden_size, output_size = 16, 32, 8
    batch = 300   # exercises pack-padding (300 -> 304 rows -> 19 packed rows)

    key = jax.random.PRNGKey(0)
    k_x, k_fw, k1, k2, k3 = jax.random.split(key, 5)

    x = jax.random.normal(k_x, (batch, input_size), jnp.float32)
    feature_weights = jax.random.uniform(k_fw, (input_size,), jnp.float32,
                                         minval=0.5, maxval=1.5)

    w1, b1 = init_linear(k1, input_size, hidden_size)
    w2, b2 = init_linear(k2, hidden_size, hidden_size)
    w3, b3 = init_linear(k3, hidden_size, output_size)
    raw_params = (w1, b1, w2, b2, w3, b3)

    ref = reference_forward_np(x, feature_weights, raw_params)

    # Default fast path: bf16 matmul inputs, f32 accumulation.
    params_bf16, pack = prepare_params(feature_weights, *raw_params,
                                       matmul_dtype=jnp.bfloat16)
    out_bf16 = jax.block_until_ready(weighted_dnn_forward(x, params_bf16, pack))
    assert out_bf16.shape == (batch, output_size)
    assert bool(jnp.all(jnp.isfinite(out_bf16)))
    assert np.allclose(np.asarray(out_bf16), ref, atol=1e-1, rtol=1e-1), \
        "bf16 path diverged from reference"

    # f32 matmul-input path.  NOTE: default MXU precision may still demote the
    # f32 matmuls to bf16 passes; exact f32 is not intended here, hence the
    # looser tolerance (use precision=HIGHEST on the dots if exactness matters).
    params_f32, pack = prepare_params(feature_weights, *raw_params,
                                      matmul_dtype=jnp.float32)
    out_f32 = jax.block_until_ready(weighted_dnn_forward(x, params_f32, pack))
    assert out_f32.shape == (batch, output_size)
    assert bool(jnp.all(jnp.isfinite(out_f32)))
    assert np.allclose(np.asarray(out_f32), ref, atol=5e-2, rtol=5e-2), \
        "f32 path diverged from reference"

    print("KERNEL_OK")
</pallas_src>

<mosaic_0001>
module attributes {stable_mosaic.version = 11 : i64} {
  func.func @weighted_dnn_kernel(%arg0: i32, %arg1: memref<24x256xf32, #tpu.memory_space<vmem>>, %arg2: memref<256x512xbf16, #tpu.memory_space<vmem>>, %arg3: memref<1x512xf32, #tpu.memory_space<vmem>>, %arg4: memref<512x512xbf16, #tpu.memory_space<vmem>>, %arg5: memref<1x512xf32, #tpu.memory_space<vmem>>, %arg6: memref<512x128xbf16, #tpu.memory_space<vmem>>, %arg7: memref<1x128xf32, #tpu.memory_space<vmem>>, %arg8: memref<24x128xf32, #tpu.memory_space<vmem>>) attributes {dimension_semantics = [#tpu.dimension_semantics<parallel>], iteration_bounds = array<i64: 1>, scalar_prefetch = 0 : i64, scratch_operands = 0 : i64, tpu.core_type = #tpu.core_type<tc>, window_params = [{transform_indices = @transform_0, window_bounds = array<i64: 24, 256>}, {pipeline_mode = #tpu.pipeline_mode<synchronous>, transform_indices = @transform_1, window_bounds = array<i64: 256, 512>}, {pipeline_mode = #tpu.pipeline_mode<synchronous>, transform_indices = @transform_2, window_bounds = array<i64: 1, 512>}, {pipeline_mode = #tpu.pipeline_mode<synchronous>, transform_indices = @transform_3, window_bounds = array<i64: 512, 512>}, {pipeline_mode = #tpu.pipeline_mode<synchronous>, transform_indices = @transform_4, window_bounds = array<i64: 1, 512>}, {pipeline_mode = #tpu.pipeline_mode<synchronous>, transform_indices = @transform_5, window_bounds = array<i64: 512, 128>}, {pipeline_mode = #tpu.pipeline_mode<synchronous>, transform_indices = @transform_6, window_bounds = array<i64: 1, 128>}, {transform_indices = @transform_7, window_bounds = array<i64: 24, 128>}]} {
    %c0 = arith.constant 0 : index
    %c0_0 = arith.constant 0 : index
    %0 = vector.load %arg1[%c0, %c0_0] : memref<24x256xf32, #tpu.memory_space<vmem>>, vector<24x256xf32>
    %1 = arith.truncf %0 : vector<24x256xf32> to vector<24x256xbf16>
    %c0_1 = arith.constant 0 : index
    %c0_2 = arith.constant 0 : index
    %2 = vector.load %arg2[%c0_1, %c0_2] : memref<256x512xbf16, #tpu.memory_space<vmem>>, vector<256x512xbf16>
    %cst = arith.constant dense<0.000000e+00> : vector<24x512xf32>
    %3 = tpu.matmul %1, %2, %cst {dimension_numbers = #tpu.dot_dimension_numbers<[1], [0], [0], [1], [0, 0, 1, 1], [], []>} : vector<24x256xbf16>, vector<256x512xbf16>, vector<24x512xf32> -> vector<24x512xf32>
    %c0_3 = arith.constant 0 : index
    %c0_4 = arith.constant 0 : index
    %4 = vector.load %arg3[%c0_3, %c0_4] : memref<1x512xf32, #tpu.memory_space<vmem>>, vector<1x512xf32>
    %5 = vector.broadcast %4 : vector<1x512xf32> to vector<24x512xf32>
    %6 = arith.addf %3, %5 : vector<24x512xf32>
    %cst_5 = arith.constant 0.000000e+00 : f32
    %7 = vector.broadcast %cst_5 : f32 to vector<24x512xf32>
    %8 = arith.maximumf %6, %7 : vector<24x512xf32>
    %9 = arith.truncf %8 : vector<24x512xf32> to vector<24x512xbf16>
    %c0_6 = arith.constant 0 : index
    %c0_7 = arith.constant 0 : index
    %10 = vector.load %arg4[%c0_6, %c0_7] : memref<512x512xbf16, #tpu.memory_space<vmem>>, vector<512x512xbf16>
    %cst_8 = arith.constant dense<0.000000e+00> : vector<24x512xf32>
    %11 = tpu.matmul %9, %10, %cst_8 {dimension_numbers = #tpu.dot_dimension_numbers<[1], [0], [0], [1], [0, 0, 1, 1], [], []>} : vector<24x512xbf16>, vector<512x512xbf16>, vector<24x512xf32> -> vector<24x512xf32>
    %c0_9 = arith.constant 0 : index
    %c0_10 = arith.constant 0 : index
    %12 = vector.load %arg5[%c0_9, %c0_10] : memref<1x512xf32, #tpu.memory_space<vmem>>, vector<1x512xf32>
    %13 = vector.broadcast %12 : vector<1x512xf32> to vector<24x512xf32>
    %14 = arith.addf %11, %13 : vector<24x512xf32>
    %cst_11 = arith.constant 0.000000e+00 : f32
    %15 = vector.broadcast %cst_11 : f32 to vector<24x512xf32>
    %16 = arith.maximumf %14, %15 : vector<24x512xf32>
    %17 = arith.truncf %16 : vector<24x512xf32> to vector<24x512xbf16>
    %c0_12 = arith.constant 0 : index
    %c0_13 = arith.constant 0 : index
    %18 = vector.load %arg6[%c0_12, %c0_13] : memref<512x128xbf16, #tpu.memory_space<vmem>>, vector<512x128xbf16>
    %cst_14 = arith.constant dense<0.000000e+00> : vector<24x128xf32>
    %19 = tpu.matmul %17, %18, %cst_14 {dimension_numbers = #tpu.dot_dimension_numbers<[1], [0], [0], [1], [0, 0, 1, 1], [], []>} : vector<24x512xbf16>, vector<512x128xbf16>, vector<24x128xf32> -> vector<24x128xf32>
    %c0_15 = arith.constant 0 : index
    %c0_16 = arith.constant 0 : index
    %20 = vector.load %arg7[%c0_15, %c0_16] : memref<1x128xf32, #tpu.memory_space<vmem>>, vector<1x128xf32>
    %21 = vector.broadcast %20 : vector<1x128xf32> to vector<24x128xf32>
    %22 = arith.addf %19, %21 : vector<24x128xf32>
    %c0_17 = arith.constant 0 : index
    %c0_18 = arith.constant 0 : index
    %23 = vector.load %arg8[%c0_17, %c0_18] : memref<24x128xf32, #tpu.memory_space<vmem>>, vector<24x128xf32>
    tpu.vector_store %arg8[%c0_17, %c0_18], %22 {strides = array<i32>} : memref<24x128xf32, #tpu.memory_space<vmem>>, vector<24x128xf32>,
    return
  }
  func.func @transform_0(%arg0: i32) -> (i32, i32) {
    %c0_i32 = arith.constant 0 : i32
    %c0_i32_0 = arith.constant 0 : i32
    return %arg0, %c0_i32 : i32, i32
  }
  func.func @transform_1(%arg0: i32) -> (i32, i32) {
    %c0_i32 = arith.constant 0 : i32
    %c0_i32_0 = arith.constant 0 : i32
    %c0_i32_1 = arith.constant 0 : i32
    return %c0_i32, %c0_i32_0 : i32, i32
  }
  func.func @transform_2(%arg0: i32) -> (i32, i32) {
    %c0_i32 = arith.constant 0 : i32
    %c0_i32_0 = arith.constant 0 : i32
    %c0_i32_1 = arith.constant 0 : i32
    return %c0_i32, %c0_i32_0 : i32, i32
  }
  func.func @transform_3(%arg0: i32) -> (i32, i32) {
    %c0_i32 = arith.constant 0 : i32
    %c0_i32_0 = arith.constant 0 : i32
    %c0_i32_1 = arith.constant 0 : i32
    return %c0_i32, %c0_i32_0 : i32, i32
  }
  func.func @transform_4(%arg0: i32) -> (i32, i32) {
    %c0_i32 = arith.constant 0 : i32
    %c0_i32_0 = arith.constant 0 : i32
    %c0_i32_1 = arith.constant 0 : i32
    return %c0_i32, %c0_i32_0 : i32, i32
  }
  func.func @transform_5(%arg0: i32) -> (i32, i32) {
    %c0_i32 = arith.constant 0 : i32
    %c0_i32_0 = arith.constant 0 : i32
    %c0_i32_1 = arith.constant 0 : i32
    return %c0_i32, %c0_i32_0 : i32, i32
  }
  func.func @transform_6(%arg0: i32) -> (i32, i32) {
    %c0_i32 = arith.constant 0 : i32
    %c0_i32_0 = arith.constant 0 : i32
    %c0_i32_1 = arith.constant 0 : i32
    return %c0_i32, %c0_i32_0 : i32, i32
  }
  func.func @transform_7(%arg0: i32) -> (i32, i32) {
    %c0_i32 = arith.constant 0 : i32
    %c0_i32_0 = arith.constant 0 : i32
    return %arg0, %c0_i32 : i32, i32
  }
}

</mosaic_0001>

<bundles_post_ra>
// kernel: tpu_custom_call.1
= control target key start
LH: loop header
LB: loop body
LE: loop exit
PB: predicated region body
PF: predicated region fallthrough
CT: control target
= control target key end

     0   :  { %12 = vsyncpa [#allocation3], 0  ;;  %s2959_s0 = inlined_call_operand.hbm [shape: f32[24,256], index: 0, kind: input, shape index: {}]   ;;  %s2960_s1 = inlined_call_operand.hbm [shape: bf16[256,512], index: 1, kind: input, shape index: {}]   ;;  %s2961_s2 = inlined_call_operand.vmem [shape: f32[1,512], index: 2, kind: input, shape index: {}]   ;;  %s2962_s3 = inlined_call_operand.hbm [shape: bf16[512,512], index: 3, kind: input, shape index: {}]   ;;  %s2963_s4 = inlined_call_operand.vmem [shape: f32[1,512], index: 4, kind: input, shape index: {}]   ;;  %s2964_s5 = inlined_call_operand.hbm [shape: bf16[512,128], index: 5, kind: input, shape index: {}]   ;;  %s2965_s6 = inlined_call_operand.vmem [shape: f32[1,128], index: 6, kind: input, shape index: {}]   ;;  %s2966_s7 = inlined_call_operand.hbm [shape: f32[24,128], index: 7, kind: output, shape index: {}]  }
   0x1   :  { %13 = vsyncpa [#allocation6], 0 }
   0x2   :  { %14 = vsyncpa [#allocation9], 0 }
   0x3   :  { %15 = vsyncpa [#allocation4], 0  ;;  %s2774_s24 = smov [#allocation5]   ;;  %s2775_s26 = smov [#allocation2]  }
   0x4   :  { %s33_s25 = sshll.u32 %s2774_s24, 4  ;;  %s21_s27 = sshll.u32 %s2775_s26, 4  ;;  %s34_s25 = int_to_ptr.vmem [resolvable:$true] %s33_s25  ;;  %s2825_s27 = int_to_ptr.vmem [resolvable:$true] %s21_s27 }
   0x5   :  { %s2656_s30 = scalar_lea.hbm %s2960_s1, 8192 }
   0x6   :  { %p2657_p0 = scmp.ne.s32.totalorder %s2960_s1, %s2656_s30  ;;  %p2660_p1 = scmp.lt.u32.totalorder %s2656_s30, %s2960_s1 }
   0x8   :  { %p2662_p2 = pnand %p2660_p1, %p2657_p0 }
   0xa   :  { %2665 = shalt.err (!%p2662_p2)
}
   0xb   :  { %s2666_s12 = scalar_lea.vmem %s34_s25, 8192  ;;  %p2671_p4 = scmp.lt.s32.totalorder %s34_s25, %s34_s25 }
   0xc   :  { %p2667_p3 = scmp.ne.s32.totalorder %s34_s25, %s2666_s12  ;;  %p2672_p5 = scmp.lt.s32.totalorder %s2666_s12, %s2666_s12 }
   0xe   :  { %p2673_p6 = por %p2672_p5, %p2671_p4 }
  0x10   :  { %p2674_p7 = pnand %p2673_p6, %p2667_p3 }
  0x12   :  { %2677 = shalt.err (!%p2674_p7)
}
  0x13   :  { %s2776_s13 = smov 256   ;;  %s2777_s14 = smov 16  }
  0x14   :  { %39 = dma.hbm_to_vmem [thread:$0]  %s2960_s1, 8192, %s34_s25, [#allocation6], %s2776_s13, %s2776_s13, %s2777_s14  }
  0x15   :  { %s2678_s19 = scalar_lea.hbm %s2959_s0, 768 }
  0x16   :  { %p2679_p8 = scmp.ne.s32.totalorder %s2959_s0, %s2678_s19  ;;  %p2682_p9 = scmp.lt.u32.totalorder %s2678_s19, %s2959_s0 }
  0x18   :  { %p2684_p10 = pnand %p2682_p9, %p2679_p8 }
  0x1a   :  { %2687 = shalt.err (!%p2684_p10)
}
  0x1b   :  { %s2688_s24 = scalar_lea.vmem %s2825_s27, 768  ;;  %p2693_p12 = scmp.lt.s32.totalorder %s2825_s27, %s2825_s27 }
  0x1c   :  { %p2689_p11 = scmp.ne.s32.totalorder %s2825_s27, %s2688_s24  ;;  %p2694_p13 = scmp.lt.s32.totalorder %s2688_s24, %s2688_s24 }
  0x1e   :  { %p2695_p0 = por %p2694_p13, %p2693_p12 }
  0x20   :  { %p2696_p1 = pnand %p2695_p0, %p2689_p11 }
  0x22   :  { %2699 = shalt.err (!%p2696_p1)
}
  0x23   :  { %27 = dma.hbm_to_vmem [thread:$0]  %s2959_s0, 768, %s2825_s27, [#allocation3], %s2776_s13, %s2776_s13, %s2777_s14  }
  0x24   :  { %s2778_s26 = smov [#allocation7]   ;;  %s2779_s29 = smov [#allocation8]  }
  0x25   :  { %s47_s28 = sshll.u32 %s2778_s26, 4  ;;  %s61_s30 = sshll.u32 %s2779_s29, 4  ;;  %s48_s28 = int_to_ptr.vmem [resolvable:$true] %s47_s28  ;;  %s2862_s30 = int_to_ptr.vmem [resolvable:$true] %s61_s30 }
  0x26   :  { %s2700_s10 = scalar_lea.hbm %s2962_s3, 16384 }
  0x27   :  { %p2701_p2 = scmp.ne.s32.totalorder %s2962_s3, %s2700_s10  ;;  %p2704_p3 = scmp.lt.u32.totalorder %s2700_s10, %s2962_s3 }
  0x29   :  { %p2706_p4 = pnand %p2704_p3, %p2701_p2 }
  0x2b   :  { %2709 = shalt.err (!%p2706_p4)
}
  0x2c   :  { %s2710_s0 = scalar_lea.vmem %s48_s28, 16384  ;;  %p2715_p6 = scmp.lt.s32.totalorder %s48_s28, %s48_s28 }
  0x2d   :  { %p2711_p5 = scmp.ne.s32.totalorder %s48_s28, %s2710_s0  ;;  %p2716_p7 = scmp.lt.s32.totalorder %s2710_s0, %s2710_s0 }
  0x2f   :  { %p2717_p8 = por %p2716_p7, %p2715_p6 }
  0x31   :  { %p2718_p9 = pnand %p2717_p8, %p2711_p5 }
  0x33   :  { %2721 = shalt.err (!%p2718_p9)
}
  0x34   :  { %53 = dma.hbm_to_vmem [thread:$0]  %s2962_s3, 16384, %s48_s28, [#allocation6], %s2776_s13, %s2776_s13, %s2777_s14  }
  0x35   :  { %s2722_s20 = scalar_lea.hbm %s2964_s5, 4096 }
  0x36   :  { %p2723_p10 = scmp.ne.s32.totalorder %s2964_s5, %s2722_s20  ;;  %p2726_p11 = scmp.lt.u32.totalorder %s2722_s20, %s2964_s5 }
  0x38   :  { %p2728_p12 = pnand %p2726_p11, %p2723_p10 }
  0x3a   :  { %2731 = shalt.err (!%p2728_p12)
}
  0x3b   :  { %s2732_s1 = scalar_lea.vmem %s2862_s30, 4096  ;;  %p2737_p0 = scmp.lt.s32.totalorder %s2862_s30, %s2862_s30 }
  0x3c   :  { %p2733_p13 = scmp.ne.s32.totalorder %s2862_s30, %s2732_s1  ;;  %p2738_p1 = scmp.lt.s32.totalorder %s2732_s1, %s2732_s1 }
  0x3e   :  { %p2739_p2 = por %p2738_p1, %p2737_p0 }
  0x40   :  { %p2740_p3 = pnand %p2739_p2, %p2733_p13 }
  0x42   :  { %2743 = shalt.err (!%p2740_p3)
}
  0x43   :  { %s2780_s3 = smov 64   ;;  %s2781_s13 = smov 4  }
  0x44   :  { %67 = dma.hbm_to_vmem [thread:$0]  %s2964_s5, 4096, %s2862_s30, [#allocation9], %s2780_s3, %s2780_s3, %s2781_s13  }
  0x45   :  { %2766 = dma.done.wait [#allocation3], 768  }
  0x46   :  { %2767 = vsyncadd [#allocation3], 4294966528 }
  0x47   :  { %2768 = dma.done.wait [#allocation6], 24576  }
  0x48   :  { %2769 = vsyncadd [#allocation6], 4294942720 }
  0x49   :  { %2770 = dma.done.wait [#allocation9], 4096  }
  0x4a   :  { %2771 = vsyncadd [#allocation9], 4294963200  ;;  %v2336_v0 = vld [vmem:[#allocation5 + $0x4] ss:$16 sps:$4 sm:$0xff]   ;;  %v2338_v1 = vld [vmem:[#allocation5] ss:$16 sps:$4 sm:$0xff]  }
  0x4b   :  { %499 = vmatprep.subr.bf16.mxu0 %v2336_v0  ;;  %v2339_v2 = vld [vmem:[#allocation5 + $0x24] ss:$16 sps:$4 sm:$0xff]   ;;  %v2341_v3 = vld [vmem:[#allocation5 + $0x20] ss:$16 sps:$4 sm:$0xff]   ;;  %v2383_v13 = vld [vmem:[#allocation5 + $0xc] ss:$16 sps:$4 sm:$0xff]  }
  0x4c   :  { %500 = vmatpush1.bf16.msra.mxu0 %v2338_v1  ;;  %v2342_v4 = vld [vmem:[#allocation5 + $0x44] ss:$16 sps:$4 sm:$0xff]   ;;  %v2344_v5 = vld [vmem:[#allocation5 + $0x40] ss:$16 sps:$4 sm:$0xff]   ;;  %v2386_v14 = vld [vmem:[#allocation5 + $0x8] ss:$16 sps:$4 sm:$0xff]   ;;  %550 = vmatprep.subr.bf16.mxu1 %v2383_v13 }
  0x4d   :  { %501 = vmatprep.subr.bf16.mxu0 %v2339_v2  ;;  %v2345_v6 = vld [vmem:[#allocation5 + $0x64] ss:$16 sps:$4 sm:$0xff]   ;;  %v2347_v7 = vld [vmem:[#allocation5 + $0x60] ss:$16 sps:$4 sm:$0xff]   ;;  %v84_v15 = vld [vmem:[#allocation2 + $0x8] sm:$0xff]  ;;  %551 = vmatpush1.bf16.msra.mxu1 %v2386_v14 }
  0x4e   :  { %v2348_v8 = vld [vmem:[#allocation5 + $0x84] ss:$16 sps:$4 sm:$0xff]   ;;  %v2350_v9 = vld [vmem:[#allocation5 + $0x80] ss:$16 sps:$4 sm:$0xff]   ;;  %v86_v18 = vld [vmem:[#allocation2 + $0x18] sm:$0xff] }
  0x4f   :  { %v2351_v10 = vld [vmem:[#allocation5 + $0xa4] ss:$16 sps:$4 sm:$0xff]   ;;  %v2353_v11 = vld [vmem:[#allocation5 + $0xa0] ss:$16 sps:$4 sm:$0xff]   ;;  %v90_v19 = vpack.c.bf16 %v86_v18, %v84_v15  ;;  %v2387_v20 = vld [vmem:[#allocation5 + $0x2c] ss:$16 sps:$4 sm:$0xff]  }
  0x50   :  { %502 = vmatpush1.bf16.msra.mxu0 %v2341_v3  ;;  %v2354_v12 = vld [vmem:[#allocation5 + $0xc4] ss:$16 sps:$4 sm:$0xff]   ;;  %v2356_v16 = vld [vmem:[#allocation5 + $0xc0] ss:$16 sps:$4 sm:$0xff]   ;;  %v2389_v21 = vld [vmem:[#allocation5 + $0x28] ss:$16 sps:$4 sm:$0xff]   ;;  %552 = vmatprep.subr.bf16.mxu1 %v2387_v20 }
  0x51   :  { %503 = vmatprep.subr.bf16.mxu0 %v2342_v4  ;;  %v2357_v17 = vld [vmem:[#allocation5 + $0xe4] ss:$16 sps:$4 sm:$0xff]   ;;  %531 = vmatprep.mubr.bf16.mxu0 %v90_v19  ;;  %v2390_v22 = vld [vmem:[#allocation5 + $0x4c] ss:$16 sps:$4 sm:$0xff]   ;;  %v2359_v23 = vld [vmem:[#allocation5 + $0xe0] ss:$16 sps:$4 sm:$0xff]  }
  0x52   :  { %v2360_v24 = vld [vmem:[#allocation5 + $0x104] ss:$16 sps:$4 sm:$0xff]   ;;  %582 = vmatprep.mubr.bf16.mxu1 %v90_v19  ;;  %553 = vmatpush1.bf16.msra.mxu1 %v2389_v21  ;;  %v2392_v25 = vld [vmem:[#allocation5 + $0x48] ss:$16 sps:$4 sm:$0xff]   ;;  %v2393_v26 = vld [vmem:[#allocation5 + $0x6c] ss:$16 sps:$4 sm:$0xff]  }
  0x53   :  { %554 = vmatprep.subr.bf16.mxu1 %v2390_v22  ;;  %v2362_v27 = vld [vmem:[#allocation5 + $0x100] ss:$16 sps:$4 sm:$0xff]   ;;  %v2363_v28 = vld [vmem:[#allocation5 + $0x124] ss:$16 sps:$4 sm:$0xff]   ;;  %v2395_v29 = vld [vmem:[#allocation5 + $0x68] ss:$16 sps:$4 sm:$0xff]  }
  0x54   :  { %504 = vmatpush1.bf16.msra.mxu0 %v2344_v5  ;;  %v2396_v30 = vld [vmem:[#allocation5 + $0x8c] ss:$16 sps:$4 sm:$0xff]   ;;  %v2365_v31 = vld [vmem:[#allocation5 + $0x120] ss:$16 sps:$4 sm:$0xff]   ;;  %v2366_v32 = vld [vmem:[#allocation5 + $0x144] ss:$16 sps:$4 sm:$0xff]  }
  0x55   :  { %505 = vmatprep.subr.bf16.mxu0 %v2345_v6  ;;  %v2398_v33 = vld [vmem:[#allocation5 + $0x88] ss:$16 sps:$4 sm:$0xff]   ;;  %v2399_v34 = vld [vmem:[#allocation5 + $0xac] ss:$16 sps:$4 sm:$0xff]   ;;  %v2368_v35 = vld [vmem:[#allocation5 + $0x140] ss:$16 sps:$4 sm:$0xff]  }
  0x56   :  { %555 = vmatpush1.bf16.msra.mxu1 %v2392_v25  ;;  %v2369_v36 = vld [vmem:[#allocation5 + $0x164] ss:$16 sps:$4 sm:$0xff]   ;;  %v2401_v37 = vld [vmem:[#allocation5 + $0xa8] ss:$16 sps:$4 sm:$0xff]   ;;  %v2402_v38 = vld [vmem:[#allocation5 + $0xcc] ss:$16 sps:$4 sm:$0xff]  }
  0x57   :  { %556 = vmatprep.subr.bf16.mxu1 %v2393_v26  ;;  %v2371_v39 = vld [vmem:[#allocation5 + $0x160] ss:$16 sps:$4 sm:$0xff]   ;;  %v2372_v40 = vld [vmem:[#allocation5 + $0x184] ss:$16 sps:$4 sm:$0xff]   ;;  %v2404_v41 = vld [vmem:[#allocation5 + $0xc8] ss:$16 sps:$4 sm:$0xff]  }
  0x58   :  { %506 = vmatpush1.bf16.msra.mxu0 %v2347_v7  ;;  %v2405_v42 = vld [vmem:[#allocation5 + $0xec] ss:$16 sps:$4 sm:$0xff]   ;;  %v2374_v43 = vld [vmem:[#allocation5 + $0x180] ss:$16 sps:$4 sm:$0xff]   ;;  %v2375_v44 = vld [vmem:[#allocation5 + $0x1a4] ss:$16 sps:$4 sm:$0xff]  }
  0x59   :  { %507 = vmatprep.subr.bf16.mxu0 %v2348_v8  ;;  %v2407_v45 = vld [vmem:[#allocation5 + $0xe8] ss:$16 sps:$4 sm:$0xff]   ;;  %v2408_v46 = vld [vmem:[#allocation5 + $0x10c] ss:$16 sps:$4 sm:$0xff]   ;;  %v2377_v47 = vld [vmem:[#allocation5 + $0x1a0] ss:$16 sps:$4 sm:$0xff]  }
  0x5a   :  { %557 = vmatpush1.bf16.msra.mxu1 %v2395_v29  ;;  %v2378_v48 = vld [vmem:[#allocation5 + $0x1c4] ss:$16 sps:$4 sm:$0xff]   ;;  %v2410_v49 = vld [vmem:[#allocation5 + $0x108] ss:$16 sps:$4 sm:$0xff]   ;;  %v2411_v50 = vld [vmem:[#allocation5 + $0x12c] ss:$16 sps:$4 sm:$0xff]  }
  0x5b   :  { %558 = vmatprep.subr.bf16.mxu1 %v2396_v30  ;;  %v2380_v51 = vld [vmem:[#allocation5 + $0x1c0] ss:$16 sps:$4 sm:$0xff]   ;;  %v2381_v52 = vld [vmem:[#allocation5 + $0x1e4] ss:$16 sps:$4 sm:$0xff]   ;;  %v2413_v53 = vld [vmem:[#allocation5 + $0x128] ss:$16 sps:$4 sm:$0xff]  }
  0x5c   :  { %508 = vmatpush1.bf16.msra.mxu0 %v2350_v9  ;;  %v2385_v54 = vld [vmem:[#allocation5 + $0x1e0] ss:$16 sps:$4 sm:$0xff]   ;;  %v2414_v56 = vld [vmem:[#allocation5 + $0x14c] ss:$16 sps:$4 sm:$0xff]   ;;  %v2416_v58 = vld [vmem:[#allocation5 + $0x148] ss:$16 sps:$4 sm:$0xff]  }
  0x5d   :  { %509 = vmatprep.subr.bf16.mxu0 %v2351_v10  ;;  %v83_v55 = vld [vmem:[#allocation2] sm:$0xff]  ;;  %v85_v57 = vld [vmem:[#allocation2 + $0x10] sm:$0xff]  ;;  %v88_v59 = vld [vmem:[#allocation2 + $0x28] sm:$0xff] }
  0x5e   :  { %559 = vmatpush1.bf16.msra.mxu1 %v2398_v33  ;;  %v2434_v60 = vld [vmem:[#allocation7 + $0x4] ss:$16 sps:$4 sm:$0xff]   ;;  %v2417_v61 = vld [vmem:[#allocation5 + $0x16c] ss:$16 sps:$4 sm:$0xff]   ;;  %v89_v62 = vpack.c.bf16 %v85_v57, %v83_v55  ;;  %v92_v63 = vpack.c.bf16 %v88_v59, %v88_v59  ;;  %v2432_v0 = vld [vmem:[#allocation7] ss:$16 sps:$4 sm:$0xff]  }
  0x5f   :  { %560 = vmatprep.subr.bf16.mxu1 %v2399_v34  ;;  %v2419_v1 = vld [vmem:[#allocation5 + $0x168] ss:$16 sps:$4 sm:$0xff]   ;;  %v2440_v2 = vld [vmem:[#allocation7 + $0x24] ss:$16 sps:$4 sm:$0xff]   ;;  %v2420_v3 = vld [vmem:[#allocation5 + $0x18c] ss:$16 sps:$4 sm:$0xff]  }
  0x60   :  { %510 = vmatpush1.bf16.msra.mxu0 %v2353_v11  ;;  %v87_v4 = vld [vmem:[#allocation2 + $0x20] sm:$0xff]  ;;  %v2422_v6 = vld [vmem:[#allocation5 + $0x188] ss:$16 sps:$4 sm:$0xff]   ;;  %v2423_v8 = vld [vmem:[#allocation5 + $0x1ac] ss:$16 sps:$4 sm:$0xff]  }
  0x61   :  { %511 = vmatprep.subr.bf16.mxu0 %v2354_v12  ;;  %v2438_v5 = vld [vmem:[#allocation7 + $0x20] ss:$16 sps:$4 sm:$0xff]   ;;  %v2446_v7 = vld [vmem:[#allocation7 + $0x44] ss:$16 sps:$4 sm:$0xff]   ;;  %v91_v9 = vpack.c.bf16 %v87_v4, %v87_v4  ;;  %v2425_v11 = vld [vmem:[#allocation5 + $0x1a8] ss:$16 sps:$4 sm:$0xff]  }
  0x62   :  { %561 = vmatpush1.bf16.msra.mxu1 %v2401_v37  ;;  %v2444_v10 = vld [vmem:[#allocation7 + $0x40] ss:$16 sps:$4 sm:$0xff]   ;;  %v2452_v12 = vld [vmem:[#allocation7 + $0x64] ss:$16 sps:$4 sm:$0xff]   ;;  %v2426_v13 = vld [vmem:[#allocation5 + $0x1cc] ss:$16 sps:$4 sm:$0xff]  }
  0x63   :  { %562 = vmatprep.subr.bf16.mxu1 %v2402_v38  ;;  %v2450_v14 = vld [vmem:[#allocation7 + $0x60] ss:$16 sps:$4 sm:$0xff]   ;;  %v2428_v15 = vld [vmem:[#allocation5 + $0x1c8] ss:$16 sps:$4 sm:$0xff]   ;;  %v2464_v20 = vld [vmem:[#allocation7 + $0xa4] ss:$16 sps:$4 sm:$0xff]  }
  0x64   :  { %512 = vmatpush1.bf16.msra.mxu0 %v2356_v16  ;;  %v2458_v16 = vld [vmem:[#allocation7 + $0x84] ss:$16 sps:$4 sm:$0xff]   ;;  %v2456_v18 = vld [vmem:[#allocation7 + $0x80] ss:$16 sps:$4 sm:$0xff]   ;;  %v2431_v19 = vld [vmem:[#allocation5 + $0x1e8] ss:$16 sps:$4 sm:$0xff]  }
  0x65   :  { %513 = vmatprep.subr.bf16.mxu0 %v2357_v17  ;;  %v2429_v17 = vld [vmem:[#allocation5 + $0x1ec] ss:$16 sps:$4 sm:$0xff]   ;;  %v2435_v22 = vld [vmem:[#allocation7 + $0x8] ss:$16 sps:$4 sm:$0xff]   ;;  %v2470_v25 = vld [vmem:[#allocation7 + $0xc4] ss:$16 sps:$4 sm:$0xff]  }
  0x66   :  { %563 = vmatpush1.bf16.msra.mxu1 %v2404_v41  ;;  %v2437_v21 = vld [vmem:[#allocation7 + $0xc] ss:$16 sps:$4 sm:$0xff]   ;;  %v2468_v26 = vld [vmem:[#allocation7 + $0xc0] ss:$16 sps:$4 sm:$0xff]   ;;  %v2483_v55 = vld [vmem:[#allocation7 + $0x108] ss:$16 sps:$4 sm:$0xff]  }
  0x67   :  { %564 = vmatprep.subr.bf16.mxu1 %v2405_v42  ;;  %v2449_v29 = vld [vmem:[#allocation7 + $0x4c] ss:$16 sps:$4 sm:$0xff]   ;;  %v2474_v30 = vld [vmem:[#allocation7 + $0xe0] ss:$16 sps:$4 sm:$0xff]   ;;  %v2489_v57 = vld [vmem:[#allocation7 + $0x128] ss:$16 sps:$4 sm:$0xff]  }
  0x68   :  { %514 = vmatpush1.bf16.msra.mxu0 %v2359_v23  ;;  %v2462_v23 = vld [vmem:[#allocation7 + $0xa0] ss:$16 sps:$4 sm:$0xff]   ;;  %v2455_v33 = vld [vmem:[#allocation7 + $0x6c] ss:$16 sps:$4 sm:$0xff]   ;;  %v2495_v59 = vld [vmem:[#allocation7 + $0x148] ss:$16 sps:$4 sm:$0xff]  }
  0x69   :  { %515 = vmatprep.subr.bf16.mxu0 %v2360_v24  ;;  %v2443_v24 = vld [vmem:[#allocation7 + $0x2c] ss:$16 sps:$4 sm:$0xff]   ;;  %v2480_v34 = vld [vmem:[#allocation7 + $0x100] ss:$16 sps:$4 sm:$0xff]  }
  0x6a   :  { %565 = vmatpush1.bf16.msra.mxu1 %v2407_v45  ;;  %v2461_v37 = vld [vmem:[#allocation7 + $0x8c] ss:$16 sps:$4 sm:$0xff]   ;;  %v2486_v38 = vld [vmem:[#allocation7 + $0x120] ss:$16 sps:$4 sm:$0xff]  }
  0x6b   :  { %566 = vmatprep.subr.bf16.mxu1 %v2408_v46  ;;  %v2467_v41 = vld [vmem:[#allocation7 + $0xac] ss:$16 sps:$4 sm:$0xff]   ;;  %v2492_v42 = vld [vmem:[#allocation7 + $0x140] ss:$16 sps:$4 sm:$0xff]  }
  0x6c   :  { %516 = vmatpush1.bf16.msra.mxu0 %v2362_v27  ;;  %v2441_v27 = vld [vmem:[#allocation7 + $0x28] ss:$16 sps:$4 sm:$0xff]   ;;  %v2473_v45 = vld [vmem:[#allocation7 + $0xcc] ss:$16 sps:$4 sm:$0xff]   ;;  %v2498_v46 = vld [vmem:[#allocation7 + $0x160] ss:$16 sps:$4 sm:$0xff]  }
  0x6d   :  { %517 = vmatprep.subr.bf16.mxu0 %v2363_v28  ;;  %v2476_v28 = vld [vmem:[#allocation7 + $0xe4] ss:$16 sps:$4 sm:$0xff]   ;;  %v2516_v4 = vld [vmem:[#allocation7 + $0x1c0] ss:$16 sps:$4 sm:$0xff]  }
  0x6e   :  { %567 = vmatpush1.bf16.msra.mxu1 %v2410_v49  ;;  %v2479_v49 = vld [vmem:[#allocation7 + $0xec] ss:$16 sps:$4 sm:$0xff]  }
  0x6f   :  { %568 = vmatprep.subr.bf16.mxu1 %v2411_v50  ;;  %v2504_v50 = vld [vmem:[#allocation7 + $0x180] ss:$16 sps:$4 sm:$0xff]  }
  0x70   :  { %518 = vmatpush1.bf16.msra.mxu0 %v2365_v31  ;;  %v2447_v31 = vld [vmem:[#allocation7 + $0x48] ss:$16 sps:$4 sm:$0xff]  }
  0x71   :  { %519 = vmatprep.subr.bf16.mxu0 %v2366_v32  ;;  %v2482_v32 = vld [vmem:[#allocation7 + $0x104] ss:$16 sps:$4 sm:$0xff]  }
  0x72   :  { %569 = vmatpush1.bf16.msra.mxu1 %v2413_v53  ;;  %v2485_v53 = vld [vmem:[#allocation7 + $0x10c] ss:$16 sps:$4 sm:$0xff]  }
  0x73   :  { %570 = vmatprep.subr.bf16.mxu1 %v2414_v56  ;;  %v2491_v56 = vld [vmem:[#allocation7 + $0x12c] ss:$16 sps:$4 sm:$0xff]  }
  0x74   :  { %520 = vmatpush1.bf16.msra.mxu0 %v2368_v35  ;;  %v2453_v35 = vld [vmem:[#allocation7 + $0x68] ss:$16 sps:$4 sm:$0xff]  }
  0x75   :  { %521 = vmatprep.subr.bf16.mxu0 %v2369_v36  ;;  %v2488_v36 = vld [vmem:[#allocation7 + $0x124] ss:$16 sps:$4 sm:$0xff]  }
  0x76   :  { %571 = vmatpush1.bf16.msra.mxu1 %v2416_v58  ;;  %v2497_v58 = vld [vmem:[#allocation7 + $0x14c] ss:$16 sps:$4 sm:$0xff]  }
  0x77   :  { %572 = vmatprep.subr.bf16.mxu1 %v2417_v61  ;;  %v2501_v61 = vld [vmem:[#allocation7 + $0x168] ss:$16 sps:$4 sm:$0xff]  }
  0x78   :  { %522 = vmatpush1.bf16.msra.mxu0 %v2371_v39  ;;  %v2459_v39 = vld [vmem:[#allocation7 + $0x88] ss:$16 sps:$4 sm:$0xff]  }
  0x79   :  { %523 = vmatprep.subr.bf16.mxu0 %v2372_v40  ;;  %v2494_v40 = vld [vmem:[#allocation7 + $0x144] ss:$16 sps:$4 sm:$0xff]  }
  0x7a   :  { %573 = vmatpush1.bf16.msra.mxu1 %v2419_v1  ;;  %v2513_v1 = vld [vmem:[#allocation7 + $0x1a8] ss:$16 sps:$4 sm:$0xff]  }
  0x7b   :  { %574 = vmatprep.subr.bf16.mxu1 %v2420_v3  ;;  %v2521_v3 = vld [vmem:[#allocation7 + $0x1cc] ss:$16 sps:$4 sm:$0xff]  }
  0x7c   :  { %524 = vmatpush1.bf16.msra.mxu0 %v2374_v43  ;;  %v2465_v43 = vld [vmem:[#allocation7 + $0xa8] ss:$16 sps:$4 sm:$0xff]  }
  0x7d   :  { %525 = vmatprep.subr.bf16.mxu0 %v2375_v44  ;;  %v2500_v44 = vld [vmem:[#allocation7 + $0x164] ss:$16 sps:$4 sm:$0xff]  }
  0x7e   :  { %575 = vmatpush1.bf16.msra.mxu1 %v2422_v6  ;;  %v2524_v6 = vld [vmem:[#allocation7 + $0x1e4] ss:$16 sps:$4 sm:$0xff]  }
  0x7f   :  { %576 = vmatprep.subr.bf16.mxu1 %v2423_v8  ;;  %v2522_v8 = vld [vmem:[#allocation7 + $0x1e0] ss:$16 sps:$4 sm:$0xff]  }
  0x80   :  { %526 = vmatpush1.bf16.msra.mxu0 %v2377_v47  ;;  %v2471_v47 = vld [vmem:[#allocation7 + $0xc8] ss:$16 sps:$4 sm:$0xff]  }
  0x81   :  { %527 = vmatprep.subr.bf16.mxu0 %v2378_v48  ;;  %v2506_v48 = vld [vmem:[#allocation7 + $0x184] ss:$16 sps:$4 sm:$0xff]  }
  0x82   :  { %577 = vmatpush1.bf16.msra.mxu1 %v2425_v11  ;;  %v2533_v11 = vld [vmem:[#allocation7 + $0x20c] ss:$16 sps:$4 sm:$0xff]  }
  0x83   :  { %578 = vmatprep.subr.bf16.mxu1 %v2426_v13 }
  0x84   :  { %528 = vmatpush1.bf16.msra.mxu0 %v2380_v51  ;;  %v2477_v51 = vld [vmem:[#allocation7 + $0xe8] ss:$16 sps:$4 sm:$0xff]  }
  0x85   :  { %529 = vmatprep.subr.bf16.mxu0 %v2381_v52  ;;  %v2512_v52 = vld [vmem:[#allocation7 + $0x1a4] ss:$16 sps:$4 sm:$0xff]  }
  0x86   :  { %579 = vmatpush1.bf16.msra.mxu1 %v2428_v15  ;;  %v157_v15 = vld [vmem:[%s2961_s2] sm:$0xf] }
  0x87   :  { %580 = vmatprep.subr.bf16.mxu1 %v2429_v17 }
  0x88   :  { %530 = vmatpush1.bf16.msra.mxu0 %v2385_v54  ;;  %v2510_v54 = vld [vmem:[#allocation7 + $0x1a0] ss:$16 sps:$4 sm:$0xff]  }
  0x89   :  { %1411 = vmatprep.subr.bf16.mxu0 %v2434_v60  ;;  %v2503_v60 = vld [vmem:[#allocation7 + $0x16c] ss:$16 sps:$4 sm:$0xff]  }
  0x8a   :  { %581 = vmatpush1.bf16.msra.mxu1 %v2431_v19 }
  0x8b   :  { %532 = vmatmul.mubr.bf16.vlgmr.msra.gmra.mrb[0].mxu0 %v89_v62  ;;  %1513 = vmatprep.subr.bf16.mxu1 %v2437_v21 }
  0x8c   :  { %541 = vmatprep.mubr.bf16.mxu0 %v92_v63  ;;  %1412 = vmatpush1.bf16.msra.mxu0 %v2432_v0  ;;  %v2515_v0 = vld [vmem:[#allocation7 + $0x1ac] ss:$16 sps:$4 sm:$0xff]  }
  0x8d   :  { %1413 = vmatprep.subr.bf16.mxu0 %v2440_v2  ;;  %583 = vmatmul.mubr.bf16.vlgmr.msra.gmra.mrb[0].mxu1 %v89_v62  ;;  %v2509_v62 = vld [vmem:[#allocation7 + $0x18c] ss:$16 sps:$4 sm:$0xff]   ;;  %v2518_v2 = vld [vmem:[#allocation7 + $0x1c4] ss:$16 sps:$4 sm:$0xff]  }
  0x8e   :  { %592 = vmatprep.mubr.bf16.mxu1 %v92_v63  ;;  %1514 = vmatpush1.bf16.msra.mxu1 %v2435_v22  ;;  %v2507_v63 = vld [vmem:[#allocation7 + $0x188] ss:$16 sps:$4 sm:$0xff]  }
  0x8f   :  { %1515 = vmatprep.subr.bf16.mxu1 %v2443_v24 }
  0x90   :  { %1414 = vmatpush1.bf16.msra.mxu0 %v2438_v5  ;;  %v2519_v5 = vld [vmem:[#allocation7 + $0x1c8] ss:$16 sps:$4 sm:$0xff]  }
  0x91   :  { %1415 = vmatprep.subr.bf16.mxu0 %v2446_v7  ;;  %v2527_v7 = vld [vmem:[#allocation7 + $0x1ec] ss:$16 sps:$4 sm:$0xff]  }
  0x92   :  { %1516 = vmatpush1.bf16.msra.mxu1 %v2441_v27 }
  0x93   :  { %542 = vmatmul.mubr.bf16.gmra.mrb[4].mxu0 %v91_v9  ;;  %1517 = vmatprep.subr.bf16.mxu1 %v2449_v29 }
  0x94   :  { %1416 = vmatpush1.bf16.msra.mxu0 %v2444_v10  ;;  %v2530_v10 = vld [vmem:[#allocation7 + $0x204] ss:$16 sps:$4 sm:$0xff]  }
  0x95   :  { %1417 = vmatprep.subr.bf16.mxu0 %v2452_v12  ;;  %593 = vmatmul.mubr.bf16.gmra.mrb[4].mxu1 %v91_v9  ;;  %v2525_v9 = vld [vmem:[#allocation7 + $0x1e8] ss:$16 sps:$4 sm:$0xff]   ;;  %v159_v12 = vlaneseq }
  0x96   :  { %1518 = vmatpush1.bf16.msra.mxu1 %v2447_v31 }
  0x97   :  { %1519 = vmatprep.subr.bf16.mxu1 %v2455_v33  ;;  %v2896_v13 = vshrl.u32 %v159_v12, 7  ;;  %v2528_v33 = vld [vmem:[#allocation7 + $0x200] ss:$16 sps:$4 sm:$0xff]  }
  0x98   :  { %1418 = vmatpush1.bf16.msra.mxu0 %v2450_v14 }
  0x99   :  { %1419 = vmatprep.subr.bf16.mxu0 %v2458_v16  ;;  %v161_v14 = vsub.s32 0, %v2896_v13  ;;  %v165_v16 = vsub.s32 1, %v2896_v13 }
  0x9a   :  { %1520 = vmatpush1.bf16.msra.mxu1 %v2453_v35 }
  0x9b   :  { %1521 = vmatprep.subr.bf16.mxu1 %v2461_v37  ;;  %v162_v17 = vrot.slane %v157_v15, %v161_v14  ;;  %v2539_v37 = vld [vmem:[#allocation7 + $0x22c] ss:$16 sps:$4 sm:$0xff]  }
  0x9c   :  { %1420 = vmatpush1.bf16.msra.mxu0 %v2456_v18  ;;  %v166_v18 = vrot.slane %v157_v15, %v165_v16 }
  0x9d   :  { %1421 = vmatprep.subr.bf16.mxu0 %v2464_v20 }
  0x9e   :  { %1522 = vmatpush1.bf16.msra.mxu1 %v2459_v39 }
  0x9f   :  { %1523 = vmatprep.subr.bf16.mxu1 %v2467_v41 }
  0xa0   :  { %1422 = vmatpush1.bf16.msra.mxu0 %v2462_v23 }
  0xa1   :  { %1423 = vmatprep.subr.bf16.mxu0 %v2470_v25 }
  0xa2   :  { %1524 = vmatpush1.bf16.msra.mxu1 %v2465_v43 }
  0xa3   :  { %1525 = vmatprep.subr.bf16.mxu1 %v2473_v45  ;;  %v2537_v45 = vld [vmem:[#allocation7 + $0x228] ss:$16 sps:$4 sm:$0xff]  }
  0xa4   :  { %1424 = vmatpush1.bf16.msra.mxu0 %v2468_v26 }
  0xa5   :  { %1425 = vmatprep.subr.bf16.mxu0 %v2476_v28 }
  0xa6   :  { %1526 = vmatpush1.bf16.msra.mxu1 %v2471_v47  ;;  %v2542_v47 = vld [vmem:[#allocation7 + $0x244] ss:$16 sps:$4 sm:$0xff]  }
  0xa7   :  { %1527 = vmatprep.subr.bf16.mxu1 %v2479_v49 }
  0xa8   :  { %1426 = vmatpush1.bf16.msra.mxu0 %v2474_v30 }
  0xa9   :  { %1427 = vmatprep.subr.bf16.mxu0 %v2482_v32 }
  0xaa   :  { %1528 = vmatpush1.bf16.msra.mxu1 %v2477_v51 }
  0xab   :  { %1529 = vmatprep.subr.bf16.mxu1 %v2485_v53  ;;  %v2540_v53 = vld [vmem:[#allocation7 + $0x240] ss:$16 sps:$4 sm:$0xff]  }
  0xac   :  { %1428 = vmatpush1.bf16.msra.mxu0 %v2480_v34  ;;  %v2531_v34 = vld [vmem:[#allocation7 + $0x208] ss:$16 sps:$4 sm:$0xff]  }
  0xad   :  { %1429 = vmatprep.subr.bf16.mxu0 %v2488_v36  ;;  %v2536_v36 = vld [vmem:[#allocation7 + $0x224] ss:$16 sps:$4 sm:$0xff]  }
  0xae   :  { %1530 = vmatpush1.bf16.msra.mxu1 %v2483_v55  ;;  %v2548_v55 = vld [vmem:[#allocation7 + $0x264] ss:$16 sps:$4 sm:$0xff]  }
  0xaf   :  { %1531 = vmatprep.subr.bf16.mxu1 %v2491_v56  ;;  %v2551_v56 = vld [vmem:[#allocation7 + $0x26c] ss:$16 sps:$4 sm:$0xff]  }
  0xb0   :  { %1430 = vmatpush1.bf16.msra.mxu0 %v2486_v38 }
  0xb1   :  { %1431 = vmatprep.subr.bf16.mxu0 %v2494_v40 }
  0xb2   :  { %1532 = vmatpush1.bf16.msra.mxu1 %v2489_v57 }
  0xb3   :  { %1533 = vmatprep.subr.bf16.mxu1 %v2497_v58 }
  0xb4   :  { %1432 = vmatpush1.bf16.msra.mxu0 %v2492_v42 }
  0xb5   :  { %1433 = vmatprep.subr.bf16.mxu0 %v2500_v44  ;;  %v2534_v44 = vld [vmem:[#allocation7 + $0x220] ss:$16 sps:$4 sm:$0xff]  }
  0xb6   :  { %1534 = vmatpush1.bf16.msra.mxu1 %v2495_v59  ;;  %v2546_v59 = vld [vmem:[#allocation7 + $0x260] ss:$16 sps:$4 sm:$0xff]  }
  0xb7   :  { %1535 = vmatprep.subr.bf16.mxu1 %v2503_v60  ;;  %v2549_v60 = vld [vmem:[#allocation7 + $0x268] ss:$16 sps:$4 sm:$0xff]  }
  0xb8   :  { %1434 = vmatpush1.bf16.msra.mxu0 %v2498_v46 }
  0xb9   :  { %1435 = vmatprep.subr.bf16.mxu0 %v2506_v48  ;;  %v2545_v48 = vld [vmem:[#allocation7 + $0x24c] ss:$16 sps:$4 sm:$0xff]  }
  0xba   :  { %1536 = vmatpush1.bf16.msra.mxu1 %v2501_v61  ;;  %v2554_v61 = vld [vmem:[#allocation7 + $0x284] ss:$16 sps:$4 sm:$0xff]  }
  0xbb   :  { %1537 = vmatprep.subr.bf16.mxu1 %v2509_v62  ;;  %v2557_v62 = vld [vmem:[#allocation7 + $0x28c] ss:$16 sps:$4 sm:$0xff]  }
  0xbc   :  { %1436 = vmatpush1.bf16.msra.mxu0 %v2504_v50  ;;  %v169_v50 = vsub.s32 2, %v2896_v13 }
  0xbd   :  { %1437 = vmatprep.subr.bf16.mxu0 %v2512_v52  ;;  %v173_v52 = vsub.s32 3, %v2896_v13 }
  0xbe   :  { %1538 = vmatpush1.bf16.msra.mxu1 %v2507_v63  ;;  %v2911_v57 = vrot.slane %v157_v15, %v169_v50 }
  0xbf   :  { %1539 = vmatprep.subr.bf16.mxu1 %v2515_v0  ;;  %v2915_v58 = vrot.slane %v157_v15, %v173_v52 }
  0xc0   :  { %1438 = vmatpush1.bf16.msra.mxu0 %v2510_v54  ;;  %v2543_v54 = vld [vmem:[#allocation7 + $0x248] ss:$16 sps:$4 sm:$0xff]  }
  0xc1   :  { %1439 = vmatprep.subr.bf16.mxu0 %v2518_v2 }
  0xc2   :  { %1540 = vmatpush1.bf16.msra.mxu1 %v2513_v1 }
  0xc3   :  { %1541 = vmatprep.subr.bf16.mxu1 %v2521_v3 }
  0xc4   :  { %1440 = vmatpush1.bf16.msra.mxu0 %v2516_v4  ;;  %v2552_v4 = vld [vmem:[#allocation7 + $0x280] ss:$16 sps:$4 sm:$0xff]  }
  0xc5   :  { %1441 = vmatprep.subr.bf16.mxu0 %v2524_v6 }
  0xc6   :  { %1542 = vmatpush1.bf16.msra.mxu1 %v2519_v5  ;;  %v2555_v5 = vld [vmem:[#allocation7 + $0x288] ss:$16 sps:$4 sm:$0xff]  }
  0xc7   :  { %1543 = vmatprep.subr.bf16.mxu1 %v2527_v7 }
  0xc8   :  { %1442 = vmatpush1.bf16.msra.mxu0 %v2522_v8 }
  0xc9   :  { %1462 = vmatprep.subr.bf16.mxu0 %v2530_v10  ;;  %v2563_v10 = vld [vmem:[#allocation7 + $0x2ac] ss:$16 sps:$4 sm:$0xff]  }
  0xca   :  { %1544 = vmatpush1.bf16.msra.mxu1 %v2525_v9  ;;  %v2560_v9 = vld [vmem:[#allocation7 + $0x2a4] ss:$16 sps:$4 sm:$0xff]  }
  0xcb   :  { %1564 = vmatprep.subr.bf16.mxu1 %v2533_v11 }
 0x15e   :  { %v533_v19 = vpop.f32.mrb[0].mxu0 }
 0x15f   :  { %v534_v20 = vadd.f32 %v533_v19, %v162_v17  ;;  %v535_v21 = vpop.f32.mrb[1].mxu0  ;;  %v2561_v19 = vld [vmem:[#allocation7 + $0x2a8] ss:$16 sps:$4 sm:$0xff]  }
 0x160   :  { %v536_v22 = vadd.f32 %v535_v21, %v166_v18  ;;  %v537_v23 = vpop.f32.mrb[2].mxu0  ;;  %v584_v63 = vpop.f32.mrb[0].mxu1  ;;  %v2566_v21 = vld [vmem:[#allocation7 + $0x2c4] ss:$16 sps:$4 sm:$0xff]  }
 0x161   :  { %v538_v24 = vadd.f32 %v537_v23, %v162_v17  ;;  %v539_v25 = vpop.f32.mrb[3].mxu0  ;;  %v601_v27 = vmax.f32 %v534_v20, 0.0  ;;  %v585_v0 = vadd.f32 %v584_v63, %v2911_v57  ;;  %v586_v1 = vpop.f32.mrb[1].mxu1  ;;  %v2617_v63 = vld [vmem:[#allocation7 + $0x3cc] ss:$16 sps:$4 sm:$0xff]  }
 0x162   :  { %v540_v26 = vadd.f32 %v539_v25, %v166_v18  ;;  %v602_v29 = vmax.f32 %v536_v22, 0.0  ;;  %v587_v2 = vadd.f32 %v586_v1, %v2915_v58  ;;  %v588_v3 = vpop.f32.mrb[2].mxu1  ;;  %v2569_v22 = vld [vmem:[#allocation7 + $0x2cc] ss:$16 sps:$4 sm:$0xff]   ;;  %v2615_v1 = vld [vmem:[#allocation7 + $0x3c8] ss:$16 sps:$4 sm:$0xff]  }
 0x163   :  { %v605_v28 = vmax.f32 %v538_v24, 0.0  ;;  %v603_v6 = vmax.f32 %v585_v0, 0.0  ;;  %v589_v7 = vadd.f32 %v588_v3, %v2911_v57  ;;  %v590_v8 = vpop.f32.mrb[3].mxu1  ;;  %v2612_v0 = vld [vmem:[#allocation7 + $0x3c0] ss:$16 sps:$4 sm:$0xff]  }
 0x164   :  { %v606_v30 = vmax.f32 %v540_v26, 0.0  ;;  %v604_v11 = vmax.f32 %v587_v2, 0.0  ;;  %v591_v12 = vadd.f32 %v590_v8, %v2915_v58  ;;  %v2620_v3 = vld [vmem:[#allocation7 + $0x3e4] ss:$16 sps:$4 sm:$0xff]  }
 0x165   :  { %v613_v31 = vpack.c.bf16 %v605_v28, %v601_v27  ;;  %v607_v15 = vmax.f32 %v589_v7, 0.0  ;;  %v2564_v27 = vld [vmem:[#allocation7 + $0x2c0] ss:$16 sps:$4 sm:$0xff]   ;;  %v2567_v28 = vld [vmem:[#allocation7 + $0x2c8] ss:$16 sps:$4 sm:$0xff]  }
 0x166   :  { %v614_v32 = vpack.c.bf16 %v606_v30, %v602_v29  ;;  %v543_v35 = vpop.f32.mrb[4].mxu0  ;;  %v2572_v30 = vld [vmem:[#allocation7 + $0x2e4] ss:$16 sps:$4 sm:$0xff]  }
 0x167   :  { %v544_v38 = vadd.f32 %v543_v35, %v162_v17  ;;  %v545_v39 = vpop.f32.mrb[5].mxu0  ;;  %v608_v17 = vmax.f32 %v591_v12, 0.0  ;;  %v2921_v20 = vpack.c.bf16 %v607_v15, %v603_v6  ;;  %v2581_v35 = vld [vmem:[#allocation7 + $0x30c] ss:$16 sps:$4 sm:$0xff]   ;;  %v2621_v6 = vld [vmem:[#allocation7 + $0x3e8] ss:$16 sps:$4 sm:$0xff]  }
 0x168   :  { %1443 = vmatprep.mubr.bf16.mxu0 %v614_v32  ;;  %1545 = vmatprep.mubr.bf16.mxu1 %v614_v32  ;;  %v546_v40 = vadd.f32 %v545_v39, %v166_v18  ;;  %v547_v41 = vpop.f32.mrb[6].mxu0  ;;  %v2558_v18 = vld [vmem:[#allocation7 + $0x2a0] ss:$16 sps:$4 sm:$0xff]   ;;  %v2923_v24 = vpop.f32.mrb[4].mxu1  ;;  %v2587_v39 = vld [vmem:[#allocation7 + $0x32c] ss:$16 sps:$4 sm:$0xff]  }
 0x169   :  { %1444 = vmatmul.mubr.bf16.vlgmr.msra.gmra.mrb[8].mxu0 %v613_v31  ;;  %1546 = vmatmul.mubr.bf16.vlgmr.msra.gmra.mrb[8].mxu1 %v613_v31  ;;  %v609_v42 = vmax.f32 %v544_v38, 0.0  ;;  %v548_v43 = vpop.f32.mrb[7].mxu0  ;;  %v616_v23 = vpack.c.bf16 %v608_v17, %v604_v11  ;;  %v2925_v25 = vpop.f32.mrb[5].mxu1  ;;  %v2575_v31 = vld [vmem:[#allocation7 + $0x2ec] ss:$16 sps:$4 sm:$0xff]   ;;  %v2624_v8 = vld [vmem:[#allocation8 + $0x40] sm:$0xff]  }
 0x16a   :  { %1463 = vmatpush1.bf16.msra.mxu0 %v2528_v33  ;;  %1565 = vmatpush1.bf16.msra.mxu1 %v2531_v34  ;;  %v610_v46 = vmax.f32 %v546_v40, 0.0  ;;  %v598_v26 = vpop.f32.mrb[6].mxu1  ;;  %v2570_v32 = vld [vmem:[#allocation7 + $0x2e0] ss:$16 sps:$4 sm:$0xff]   ;;  %v2573_v33 = vld [vmem:[#allocation7 + $0x2e8] ss:$16 sps:$4 sm:$0xff]   ;;  %v597_v2 = vadd.f32 %v2925_v25, %v2915_v58 }
 0x16b   :  { %1464 = vmatprep.subr.bf16.mxu0 %v2536_v36  ;;  %1566 = vmatprep.subr.bf16.mxu1 %v2539_v37  ;;  %v617_v51 = vpack.c.bf16 %v609_v42, %v609_v42  ;;  %v599_v29 = vpop.f32.mrb[7].mxu1  ;;  %v2578_v34 = vld [vmem:[#allocation7 + $0x304] ss:$16 sps:$4 sm:$0xff]   ;;  %v2576_v36 = vld [vmem:[#allocation7 + $0x300] ss:$16 sps:$4 sm:$0xff]   ;;  %v2628_v15 = vld [vmem:[#allocation8 + $0x48] sm:$0xff]  }
 0x16c   :  { %v618_v49 = vpack.c.bf16 %v610_v46, %v610_v46  ;;  %v2579_v37 = vld [vmem:[#allocation7 + $0x308] ss:$16 sps:$4 sm:$0xff]   ;;  %v2584_v38 = vld [vmem:[#allocation7 + $0x324] ss:$16 sps:$4 sm:$0xff]   ;;  %v2582_v40 = vld [vmem:[#allocation7 + $0x320] ss:$16 sps:$4 sm:$0xff]  }
 0x16d   :  { %v2585_v41 = vld [vmem:[#allocation7 + $0x328] ss:$16 sps:$4 sm:$0xff]   ;;  %v2590_v42 = vld [vmem:[#allocation7 + $0x344] ss:$16 sps:$4 sm:$0xff]   ;;  %v2593_v43 = vld [vmem:[#allocation7 + $0x34c] ss:$16 sps:$4 sm:$0xff]  }
 0x16e   :  { %1465 = vmatpush1.bf16.msra.mxu0 %v2534_v44  ;;  %1567 = vmatpush1.bf16.msra.mxu1 %v2537_v45  ;;  %v2588_v44 = vld [vmem:[#allocation7 + $0x340] ss:$16 sps:$4 sm:$0xff]   ;;  %v2591_v45 = vld [vmem:[#allocation7 + $0x348] ss:$16 sps:$4 sm:$0xff]   ;;  %v2596_v46 = vld [vmem:[#allocation7 + $0x364] ss:$16 sps:$4 sm:$0xff]  }
 0x16f   :  { %1466 = vmatprep.subr.bf16.mxu0 %v2542_v47  ;;  %1568 = vmatprep.subr.bf16.mxu1 %v2545_v48  ;;  %v2599_v47 = vld [vmem:[#allocation7 + $0x36c] ss:$16 sps:$4 sm:$0xff]   ;;  %v2594_v48 = vld [vmem:[#allocation7 + $0x360] ss:$16 sps:$4 sm:$0xff]   ;;  %v612_v7 = vmax.f32 %v597_v2, 0.0 }
 0x170   :  { %1453 = vmatprep.mubr.bf16.mxu0 %v618_v49  ;;  %1555 = vmatprep.mubr.bf16.mxu1 %v618_v49  ;;  %v2597_v49 = vld [vmem:[#allocation7 + $0x368] ss:$16 sps:$4 sm:$0xff]   ;;  %v2626_v58 = vld [vmem:[#allocation8] sm:$0xff]   ;;  %v2635_v25 = vld [vmem:[#allocation8 + $0x90] sm:$0xff]  }
 0x171   :  { %1454 = vmatmul.mubr.bf16.gmra.mrb[12].mxu0 %v617_v51  ;;  %1556 = vmatmul.mubr.bf16.gmra.mrb[12].mxu1 %v617_v51  ;;  %v2602_v51 = vld [vmem:[#allocation7 + $0x384] ss:$16 sps:$4 sm:$0xff]   ;;  %v620_v11 = vpack.c.bf16 %v612_v7, %v612_v7  ;;  %v2629_v17 = vld [vmem:[#allocation8 + $0xc8] sm:$0xff]   ;;  %v2636_v26 = vld [vmem:[#allocation8 + $0x58] sm:$0xff]  }
 0x172   :  { %1467 = vmatpush1.bf16.msra.mxu0 %v2540_v53  ;;  %1569 = vmatpush1.bf16.msra.mxu1 %v2543_v54  ;;  %v2605_v53 = vld [vmem:[#allocation7 + $0x38c] ss:$16 sps:$4 sm:$0xff]   ;;  %v2600_v54 = vld [vmem:[#allocation7 + $0x380] ss:$16 sps:$4 sm:$0xff]  }
 0x173   :  { %1468 = vmatprep.subr.bf16.mxu0 %v2548_v55  ;;  %1570 = vmatprep.subr.bf16.mxu1 %v2551_v56  ;;  %v2603_v55 = vld [vmem:[#allocation7 + $0x388] ss:$16 sps:$4 sm:$0xff]   ;;  %v2608_v56 = vld [vmem:[#allocation7 + $0x3a4] ss:$16 sps:$4 sm:$0xff]  }
 0x174   :  { %1494 = vmatprep.mubr.bf16.mxu0 %v616_v23  ;;  %1596 = vmatprep.mubr.bf16.mxu1 %v616_v23  ;;  %v2627_v12 = vld [vmem:[#allocation8 + $0x80] sm:$0xff]  }
 0x175   :  { %v2640_v29 = vld [vmem:[#allocation8 + $0x60] sm:$0xff]  }
 0x176   :  { %1469 = vmatpush1.bf16.msra.mxu0 %v2546_v59  ;;  %1571 = vmatpush1.bf16.msra.mxu1 %v2549_v60  ;;  %v2611_v59 = vld [vmem:[#allocation7 + $0x3ac] ss:$16 sps:$4 sm:$0xff]   ;;  %v2606_v60 = vld [vmem:[#allocation7 + $0x3a0] ss:$16 sps:$4 sm:$0xff]  }
 0x177   :  { %1470 = vmatprep.subr.bf16.mxu0 %v2554_v61  ;;  %1572 = vmatprep.subr.bf16.mxu1 %v2557_v62  ;;  %v2609_v61 = vld [vmem:[#allocation7 + $0x3a8] ss:$16 sps:$4 sm:$0xff]   ;;  %v2614_v62 = vld [vmem:[#allocation7 + $0x3c4] ss:$16 sps:$4 sm:$0xff]  }
 0x17a   :  { %1471 = vmatpush1.bf16.msra.mxu0 %v2552_v4  ;;  %1573 = vmatpush1.bf16.msra.mxu1 %v2555_v5  ;;  %v2623_v4 = vld [vmem:[#allocation7 + $0x3ec] ss:$16 sps:$4 sm:$0xff]   ;;  %v2618_v5 = vld [vmem:[#allocation7 + $0x3e0] ss:$16 sps:$4 sm:$0xff]  }
 0x17b   :  { %1472 = vmatprep.subr.bf16.mxu0 %v2560_v9  ;;  %1574 = vmatprep.subr.bf16.mxu1 %v2563_v10  ;;  %v2625_v9 = vld [vmem:[#allocation8 + $0xc0] sm:$0xff]   ;;  %v595_v10 = vadd.f32 %v2923_v24, %v2911_v57  ;;  %v2631_v57 = vld [vmem:[#allocation8 + $0x88] sm:$0xff]   ;;  %v2634_v24 = vld [vmem:[#allocation8 + $0x10] sm:$0xff]  }
 0x17e   :  { %1473 = vmatpush1.bf16.msra.mxu0 %v2558_v18  ;;  %1575 = vmatpush1.bf16.msra.mxu1 %v2561_v19  ;;  %v611_v18 = vmax.f32 %v595_v10, 0.0  ;;  %v2630_v19 = vld [vmem:[#allocation8 + $0x8] sm:$0xff]  }
 0x17f   :  { %1474 = vmatprep.subr.bf16.mxu0 %v2566_v21  ;;  %1576 = vmatprep.subr.bf16.mxu1 %v2569_v22  ;;  %v2632_v21 = vld [vmem:[#allocation8 + $0x50] sm:$0xff]  }
 0x180   :  { %v2633_v22 = vld [vmem:[#allocation8 + $0xd0] sm:$0xff]   ;;  %v619_v23 = vpack.c.bf16 %v611_v18, %v611_v18 }
 0x182   :  { %1475 = vmatpush1.bf16.msra.mxu0 %v2564_v27  ;;  %1577 = vmatpush1.bf16.msra.mxu1 %v2567_v28  ;;  %v2637_v27 = vld [vmem:[#allocation8 + $0xd8] sm:$0xff]  }
 0x183   :  { %1476 = vmatprep.subr.bf16.mxu0 %v2572_v30  ;;  %1578 = vmatprep.subr.bf16.mxu1 %v2575_v31  ;;  %v2639_v28 = vld [vmem:[#allocation8 + $0x98] sm:$0xff]   ;;  %v2641_v30 = vld [vmem:[#allocation8 + $0xe0] sm:$0xff]  }
 0x184   :  { %v2642_v31 = vld [vmem:[#allocation8 + $0x20] sm:$0xff]  }
 0x186   :  { %1477 = vmatpush1.bf16.msra.mxu0 %v2570_v32  ;;  %1579 = vmatpush1.bf16.msra.mxu1 %v2573_v33  ;;  %v2643_v32 = vld [vmem:[#allocation8 + $0xa0] sm:$0xff]   ;;  %v2644_v33 = vld [vmem:[#allocation8 + $0x68] sm:$0xff]  }
 0x187   :  { %1478 = vmatprep.subr.bf16.mxu0 %v2578_v34  ;;  %1580 = vmatprep.subr.bf16.mxu1 %v2581_v35  ;;  %v2645_v34 = vld [vmem:[#allocation8 + $0xe8] sm:$0xff]  }
 0x188   :  { %v2646_v35 = vld [vmem:[#allocation8 + $0x28] sm:$0xff]  }
 0x18a   :  { %1479 = vmatpush1.bf16.msra.mxu0 %v2576_v36  ;;  %1581 = vmatpush1.bf16.msra.mxu1 %v2579_v37  ;;  %v2647_v36 = vld [vmem:[#allocation8 + $0xa8] sm:$0xff]   ;;  %v2648_v37 = vld [vmem:[#allocation8 + $0x70] sm:$0xff]  }
 0x18b   :  { %1480 = vmatprep.subr.bf16.mxu0 %v2584_v38  ;;  %1582 = vmatprep.subr.bf16.mxu1 %v2587_v39  ;;  %v2649_v38 = vld [vmem:[#allocation8 + $0xf0] sm:$0xff]  }
 0x18c   :  { %v2650_v39 = vld [vmem:[#allocation8 + $0x30] sm:$0xff]  }
 0x18e   :  { %1481 = vmatpush1.bf16.msra.mxu0 %v2582_v40  ;;  %1583 = vmatpush1.bf16.msra.mxu1 %v2585_v41  ;;  %v2651_v40 = vld [vmem:[#allocation8 + $0xb0] sm:$0xff]   ;;  %v2652_v41 = vld [vmem:[#allocation8 + $0x78] sm:$0xff]  }
 0x18f   :  { %1482 = vmatprep.subr.bf16.mxu0 %v2590_v42  ;;  %1584 = vmatprep.subr.bf16.mxu1 %v2593_v43  ;;  %v2653_v42 = vld [vmem:[#allocation8 + $0xf8] sm:$0xff]  }
 0x190   :  { %v2654_v43 = vld [vmem:[#allocation8 + $0x38] sm:$0xff]  }
 0x192   :  { %1483 = vmatpush1.bf16.msra.mxu0 %v2588_v44  ;;  %1585 = vmatpush1.bf16.msra.mxu1 %v2591_v45  ;;  %v2655_v44 = vld [vmem:[#allocation8 + $0xb8] sm:$0xff]   ;;  %v749_v45 = vld [vmem:[%s2963_s4] sm:$0xf] }
 0x193   :  { %1484 = vmatprep.subr.bf16.mxu0 %v2596_v46  ;;  %1586 = vmatprep.subr.bf16.mxu1 %v2599_v47  ;;  %v754_v46 = vrot.slane %v749_v45, %v161_v14  ;;  %v762_v47 = vrot.slane %v749_v45, %v169_v50 }
 0x196   :  { %1485 = vmatpush1.bf16.msra.mxu0 %v2594_v48  ;;  %1587 = vmatpush1.bf16.msra.mxu1 %v2597_v49  ;;  %v758_v48 = vrot.slane %v749_v45, %v165_v16  ;;  %v766_v49 = vrot.slane %v749_v45, %v173_v52 }
 0x197   :  { %1486 = vmatprep.subr.bf16.mxu0 %v2602_v51  ;;  %1588 = vmatprep.subr.bf16.mxu1 %v2605_v53 }
 0x19a   :  { %1487 = vmatpush1.bf16.msra.mxu0 %v2600_v54  ;;  %1589 = vmatpush1.bf16.msra.mxu1 %v2603_v55 }
 0x19b   :  { %1488 = vmatprep.subr.bf16.mxu0 %v2608_v56  ;;  %1590 = vmatprep.subr.bf16.mxu1 %v2611_v59 }
 0x19e   :  { %1489 = vmatpush1.bf16.msra.mxu0 %v2606_v60  ;;  %1591 = vmatpush1.bf16.msra.mxu1 %v2609_v61 }
 0x19f   :  { %1490 = vmatprep.subr.bf16.mxu0 %v2614_v62  ;;  %1592 = vmatprep.subr.bf16.mxu1 %v2617_v63 }
 0x1a2   :  { %1491 = vmatpush1.bf16.msra.mxu0 %v2612_v0  ;;  %1593 = vmatpush1.bf16.msra.mxu1 %v2615_v1 }
 0x1a3   :  { %1492 = vmatprep.subr.bf16.mxu0 %v2620_v3  ;;  %1594 = vmatprep.subr.bf16.mxu1 %v2623_v4 }
 0x1a6   :  { %1493 = vmatpush1.bf16.msra.mxu0 %v2618_v5  ;;  %1595 = vmatpush1.bf16.msra.mxu1 %v2621_v6 }
 0x1a7   :  { %2241 = vmatprep.subr.bf16.mxu0 %v2624_v8  ;;  %2269 = vmatprep.subr.bf16.mxu1 %v2625_v9 }
 0x1a9   :  { %1495 = vmatmul.mubr.bf16.vlgmr.msra.gmra.mrb[8].mxu0 %v2921_v20  ;;  %1597 = vmatmul.mubr.bf16.vlgmr.msra.gmra.mrb[8].mxu1 %v2921_v20  ;;  %v2638_v20 = vld [vmem:[#allocation8 + $0x18] sm:$0xff]  }
 0x1aa   :  { %1504 = vmatprep.mubr.bf16.mxu0 %v620_v11  ;;  %1606 = vmatprep.mubr.bf16.mxu1 %v620_v11 }
 0x1ab   :  { %2242 = vmatpush3.bf16.msra.mxu0 %v2626_v58  ;;  %2270 = vmatpush3.bf16.msra.mxu1 %v2627_v12 }
 0x1ac   :  { %2243 = vmatprep.subr.bf16.mxu0 %v2628_v15  ;;  %2271 = vmatprep.subr.bf16.mxu1 %v2629_v17 }
 0x1af   :  { %2244 = vmatpush3.bf16.msra.mxu0 %v2630_v19  ;;  %2272 = vmatpush3.bf16.msra.mxu1 %v2631_v57 }
 0x1b0   :  { %2245 = vmatprep.subr.bf16.mxu0 %v2632_v21  ;;  %2273 = vmatprep.subr.bf16.mxu1 %v2633_v22 }
 0x1b1   :  { %1505 = vmatmul.mubr.bf16.gmra.mrb[12].mxu0 %v619_v23  ;;  %1607 = vmatmul.mubr.bf16.gmra.mrb[12].mxu1 %v619_v23 }
 0x1b3   :  { %2246 = vmatpush3.bf16.msra.mxu0 %v2634_v24  ;;  %2274 = vmatpush3.bf16.msra.mxu1 %v2635_v25 }
 0x1b4   :  { %2247 = vmatprep.subr.bf16.mxu0 %v2636_v26  ;;  %2275 = vmatprep.subr.bf16.mxu1 %v2637_v27 }
 0x1b7   :  { %2248 = vmatpush3.bf16.msra.mxu0 %v2638_v20  ;;  %2276 = vmatpush3.bf16.msra.mxu1 %v2639_v28 }
 0x1b8   :  { %2249 = vmatprep.subr.bf16.mxu0 %v2640_v29  ;;  %2277 = vmatprep.subr.bf16.mxu1 %v2641_v30 }
 0x1bb   :  { %2250 = vmatpush3.bf16.msra.mxu0 %v2642_v31  ;;  %2278 = vmatpush3.bf16.msra.mxu1 %v2643_v32 }
 0x1bc   :  { %2251 = vmatprep.subr.bf16.mxu0 %v2644_v33  ;;  %2279 = vmatprep.subr.bf16.mxu1 %v2645_v34 }
 0x1bf   :  { %2252 = vmatpush3.bf16.msra.mxu0 %v2646_v35  ;;  %2280 = vmatpush3.bf16.msra.mxu1 %v2647_v36  ;;  %v2208_v36 = vld [vmem:[%s2965_s6] ss:$0 sm:$0xff]  ;;  %s2782_s6 = smov [#allocation10]  }
 0x1c0   :  { %2253 = vmatprep.subr.bf16.mxu0 %v2648_v37  ;;  %2281 = vmatprep.subr.bf16.mxu1 %v2649_v38  ;;  %s2002_s30 = sshll.u32 %s2782_s6, 4  ;;  %s2003_s30 = int_to_ptr.vmem [resolvable:$true] %s2002_s30 }
 0x1c1   :  { %s2744_s8 = scalar_lea.vmem %s2003_s30, 384  ;;  %p2749_p5 = scmp.lt.s32.totalorder %s2003_s30, %s2003_s30 }
 0x1c2   :  { %p2745_p4 = scmp.ne.s32.totalorder %s2003_s30, %s2744_s8  ;;  %p2750_p6 = scmp.lt.s32.totalorder %s2744_s8, %s2744_s8 }
 0x1c3   :  { %2254 = vmatpush3.bf16.msra.mxu0 %v2650_v39  ;;  %2282 = vmatpush3.bf16.msra.mxu1 %v2651_v40 }
 0x1c4   :  { %2255 = vmatprep.subr.bf16.mxu0 %v2652_v41  ;;  %2283 = vmatprep.subr.bf16.mxu1 %v2653_v42  ;;  %p2751_p7 = por %p2750_p6, %p2749_p5 }
 0x1c6   :  { %p2752_p8 = pnand %p2751_p7, %p2745_p4 }
 0x1c7   :  { %2256 = vmatpush3.bf16.msra.mxu0 %v2654_v43  ;;  %2284 = vmatpush3.bf16.msra.mxu1 %v2655_v44 }
 0x27c   :  { %v1496_v51 = vpop.f32.mrb[8].mxu0  ;;  %v1598_v53 = vpop.f32.mrb[8].mxu1 }
 0x27d   :  { %v2297_v54 = vadd.f32 %v1496_v51, %v754_v46  ;;  %v2303_v55 = vadd.f32 %v1598_v53, %v762_v47  ;;  %v1498_v56 = vpop.f32.mrb[9].mxu0  ;;  %v1600_v59 = vpop.f32.mrb[9].mxu1 }
 0x27e   :  { %v2298_v60 = vadd.f32 %v1498_v56, %v758_v48  ;;  %v2304_v61 = vadd.f32 %v1600_v59, %v766_v49  ;;  %v1500_v62 = vpop.f32.mrb[10].mxu0  ;;  %v1602_v63 = vpop.f32.mrb[10].mxu1 }
 0x27f   :  { %v2299_v14 = vadd.f32 %v1500_v62, %v754_v46  ;;  %v2305_v0 = vadd.f32 %v1602_v63, %v762_v47  ;;  %v1502_v1 = vpop.f32.mrb[11].mxu0  ;;  %v1604_v50 = vpop.f32.mrb[11].mxu1  ;;  %v1615_v16 = vmax.f32 %v2297_v54, 0.0  ;;  %v1617_v4 = vmax.f32 %v2303_v55, 0.0 }
 0x280   :  { %v2300_v2 = vadd.f32 %v1502_v1, %v758_v48  ;;  %v2306_v3 = vadd.f32 %v1604_v50, %v766_v49  ;;  %v1616_v5 = vmax.f32 %v2298_v60, 0.0  ;;  %v1618_v6 = vmax.f32 %v2304_v61, 0.0 }
 0x281   :  { %v1619_v13 = vmax.f32 %v2299_v14, 0.0  ;;  %v1621_v52 = vmax.f32 %v2305_v0, 0.0 }
 0x282   :  { %v1620_v7 = vmax.f32 %v2300_v2, 0.0  ;;  %v1622_v8 = vmax.f32 %v2306_v3, 0.0 }
 0x283   :  { %v1627_v9 = vpack.c.bf16 %v1619_v13, %v1615_v16  ;;  %v1629_v10 = vpack.c.bf16 %v1621_v52, %v1617_v4 }
 0x284   :  { %v1628_v11 = vpack.c.bf16 %v1620_v7, %v1616_v5  ;;  %v1630_v58 = vpack.c.bf16 %v1622_v8, %v1618_v6  ;;  %v1506_v12 = vpop.f32.mrb[12].mxu0  ;;  %v1608_v15 = vpop.f32.mrb[12].mxu1 }
 0x285   :  { %v2301_v17 = vadd.f32 %v1506_v12, %v754_v46  ;;  %v2307_v18 = vadd.f32 %v1608_v15, %v762_v47  ;;  %v1508_v19 = vpop.f32.mrb[13].mxu0  ;;  %v1610_v57 = vpop.f32.mrb[13].mxu1 }
 0x286   :  { %v2302_v21 = vadd.f32 %v1508_v19, %v758_v48  ;;  %v2308_v22 = vadd.f32 %v1610_v57, %v766_v49  ;;  %v1510_v23 = vpop.f32.mrb[14].mxu0  ;;  %v1612_v24 = vpop.f32.mrb[14].mxu1  ;;  %1930 = vmatprep.mubr.bf16.mxu0 %v1628_v11  ;;  %1978 = vmatprep.mubr.bf16.mxu1 %v1630_v58 }
 0x287   :  { %v1511_v25 = vpop.f32.mrb[15].mxu0  ;;  %v1613_v26 = vpop.f32.mrb[15].mxu1  ;;  %1931 = vmatmul.mubr.bf16.vlgmr.msra.gmra.mrb[16].mxu0 %v1627_v9  ;;  %1979 = vmatmul.mubr.bf16.vlgmr.msra.gmra.mrb[16].mxu1 %v1629_v10  ;;  %v1623_v28 = vmax.f32 %v2301_v17, 0.0  ;;  %v1625_v29 = vmax.f32 %v2307_v18, 0.0 }
 0x288   :  { %v1624_v27 = vmax.f32 %v2302_v21, 0.0  ;;  %v1626_v20 = vmax.f32 %v2308_v22, 0.0 }
 0x289   :  { %v1631_v32 = vpack.c.bf16 %v1623_v28, %v1623_v28  ;;  %v1633_v33 = vpack.c.bf16 %v1625_v29, %v1625_v29 }
 0x28a   :  { %v1632_v30 = vpack.c.bf16 %v1624_v27, %v1624_v27  ;;  %v1634_v31 = vpack.c.bf16 %v1626_v20, %v1626_v20 }
 0x28c   :  { %1938 = vmatprep.mubr.bf16.mxu0 %v1632_v30  ;;  %1986 = vmatprep.mubr.bf16.mxu1 %v1634_v31 }
 0x28f   :  { %1939 = vmatmul.mubr.bf16.gmra.mrb[20].mxu0 %v1631_v32  ;;  %1987 = vmatmul.mubr.bf16.gmra.mrb[20].mxu1 %v1633_v33 }
 0x35a   :  { %v2257_v34 = vpop.f32.mrb[16].mxu0  ;;  %v2285_v35 = vpop.f32.mrb[16].mxu1 }
 0x35b   :  { %v2258_v37 = vpop.f32.mrb[17].mxu0  ;;  %v2286_v38 = vpop.f32.mrb[17].mxu1 }
 0x35c   :  { %v2259_v39 = vadd.f32 %v2258_v37, %v2257_v34  ;;  %v2287_v40 = vadd.f32 %v2286_v38, %v2285_v35  ;;  %v2260_v41 = vpop.f32.mrb[18].mxu0  ;;  %v2288_v42 = vpop.f32.mrb[18].mxu1 }
 0x35d   :  { %v2261_v43 = vpop.f32.mrb[19].mxu0  ;;  %v2289_v44 = vpop.f32.mrb[19].mxu1 }
 0x35e   :  { %v1933_v45 = vadd.f32 %v2259_v39, %v2208_v36  ;;  %v2262_v46 = vadd.f32 %v2261_v43, %v2260_v41  ;;  %v2290_v47 = vadd.f32 %v2289_v44, %v2288_v42 }
 0x360   :  { %v1981_v48 = vadd.f32 %v2287_v40, %v1933_v45  ;;  %v1936_v49 = vadd.f32 %v2262_v46, %v2208_v36 }
 0x362   :  { %1994 = vst [vmem:[#allocation10] sm:$0xff] %v1981_v48  ;;  %v1984_v51 = vadd.f32 %v2290_v47, %v1936_v49  ;;  %v2263_v53 = vpop.f32.mrb[20].mxu0  ;;  %v2291_v54 = vpop.f32.mrb[20].mxu1 }
 0x363   :  { %v2264_v55 = vpop.f32.mrb[21].mxu0  ;;  %v2292_v56 = vpop.f32.mrb[21].mxu1 }
 0x364   :  { %1995 = vst [vmem:[#allocation10 + $0x8] sm:$0xff] %v1984_v51  ;;  %v2265_v59 = vadd.f32 %v2264_v55, %v2263_v53  ;;  %v2293_v60 = vadd.f32 %v2292_v56, %v2291_v54  ;;  %v2266_v61 = vpop.f32.mrb[22].mxu0  ;;  %v2294_v62 = vpop.f32.mrb[22].mxu1 }
 0x365   :  { %v2267_v63 = vpop.f32.mrb[23].mxu0  ;;  %v2295_v14 = vpop.f32.mrb[23].mxu1 }
 0x366   :  { %v1941_v0 = vadd.f32 %v2265_v59, %v2208_v36 }
 0x368   :  { %v1989_v1 = vadd.f32 %v2293_v60, %v1941_v0 }
 0x36a   :  { %1996 = vst [vmem:[#allocation10 + $0x10] sm:$0xff] %v1989_v1 }
 0x36b   :  { %2755 = shalt.err (!%p2752_p8)
}
 0x36c   :  { %s2756_s11 = scalar_lea.hbm %s2966_s7, 384 }
 0x36d   :  { %p2757_p9 = scmp.ne.s32.totalorder %s2966_s7, %s2756_s11  ;;  %p2760_p10 = scmp.lt.u32.totalorder %s2756_s11, %s2966_s7 }
 0x36f   :  { %p2762_p11 = pnand %p2760_p10, %p2757_p9 }
 0x371   :  { %2765 = shalt.err (!%p2762_p11)
}
 0x372   :  { %s2783_s27 = smov 128   ;;  %s2784_s17 = smov 8  }
 0x373   :  { %2008 = dma.vmem_to_hbm [thread:$0]  %s2003_s30, 384, %s2966_s7, [#allocation4], %s2783_s27, %s2783_s27, %s2784_s17  }
 0x374   :  { %2772 = dma.done.wait [#allocation4], 384  }
 0x375   :  { %2773 = vsyncadd [#allocation4], 4294966912 }
 0x376   :  { %2012 = vsyncpa [#allocation3], 1 }
 0x377   :  { %2013 = vsyncpa [#allocation6], 1 }
 0x378   :  { %2014 = vsyncpa [#allocation9], 1 }
 0x379   :  { %2015 = vsyncpa [#allocation4], 1 }

</bundles_post_ra>
